<compile_context>
chip_gen: v7x
topology: tpu7x:2x2x1
jax: 0.10.0
libtpu: 0.0.40
codegen_flags: <defaults>
</compile_context>

<pallas_src>
import functools

import jax
import jax.numpy as jnp
from jax.experimental import pallas as pl
from jax.experimental.pallas import tpu as pltpu


def _round_up(n: int, m: int) -> int:
    return ((n + m - 1) // m) * m


def t2v_kernel(x_ref, w_ref, m_ref, o_ref, *, use_sin: bool):
    # x_ref: (TB, K_pad)      batch tile, columns = [x | 1 | 0-pad]
    # w_ref: (K_pad, F_pad)   resident lane-dense weights (+ bias row, 0-pad)
    # m_ref: (1, F_pad)       resident mask: 1.0 on linear ("bias") columns
    # o_ref: (TB, F_pad)      lane-dense flattened output
    z = jnp.dot(x_ref[...], w_ref[...], preferred_element_type=jnp.float32)
    # TODO(synk): if bundle dumps show VALU saturation on v6e/v7x, replace
    # jnp.sin/cos with a cheaper bounded-domain range-reduction + polynomial.
    act = jnp.sin(z) if use_sin else jnp.cos(z)
    o_ref[...] = jnp.where(m_ref[...] != 0.0, z, act).astype(o_ref.dtype)


def _pick_batch_tile(B, F_pad, K_pad, out_itemsize):
    """Batch tile: 16-row aligned, >=~4 grid steps when B allows, VMEM-capped."""
    ALIGN = 16                     # valid sublane tile for both bf16 and f32 output
    if B <= ALIGN:
        return B                   # single block == full array dims
    tb = pl.cdiv(B, 4)             # >=4 steps -> both v7x TensorCores get >=2 blocks
    tb = min(tb, 8192)             # multi-MiB DMAs already; no need to go bigger
    per_row = 2 * (F_pad * out_itemsize + K_pad * 4)   # double-buffered in + out
    tb = min(tb, max(ALIGN, (12 << 20) // per_row))    # fit default scoped VMEM
    tb = max(ALIGN, (tb // ALIGN) * ALIGN)
    return tb


def t2v_forward(x, wb, bb, wa, ba, activation="sin", *, out_dtype=jnp.bfloat16):
    """x: [B, 1, in_dim] -> [B, in_dim, emb_dim].

    out_dtype defaults to bfloat16 (halves the dominant HBM writeback per the
    perf review); pass out_dtype=x.dtype to match the PyTorch module's f32
    output. Compute/accumulation is f32 inside the kernel either way.
    """
    B, one, in_dim = x.shape
    assert one == 1
    emb_dim = wa.shape[1] + 1

    F = in_dim * emb_dim
    F_pad = _round_up(F, 128)       # keep output stores unmasked full-lane
    K = in_dim + 1                  # +1 ones column folds the bias add into the matmul
    K_pad = _round_up(K, 8)

    # --- parameter prep (cheap, parameter-sized, hoisted out of the kernel) ---
    w_cat = jnp.concatenate([wb, wa], axis=-1).astype(jnp.float32)   # (in_dim, emb_dim)
    b_cat = jnp.concatenate([bb, ba], axis=-1).astype(jnp.float32)   # (in_dim, emb_dim)
    # Lane-dense tiling: flattened column j = i*emb_dim + e uses W[:, e], bias B[i, e].
    w_flat = jnp.tile(w_cat, (1, in_dim))                            # (in_dim, F)
    b_flat = b_cat.reshape(F)                                        # (F,) row-major
    w_aug = jnp.zeros((K_pad, F_pad), jnp.float32)
    w_aug = w_aug.at[:in_dim, :F].set(w_flat)
    w_aug = w_aug.at[in_dim, :F].set(b_flat)                         # hit by the ones column

    w_bytes = K_pad * F_pad * 4
    if w_bytes > (8 << 20):
        # TODO(synk): at large in_dim switch to a 2D (batch x feature) grid with an
        # un-tiled (in_dim, emb_dim) weight; the lane-dense slab scales as
        # in_dim^2*emb_dim and would blow v7x's 64 MiB VMEM.
        raise ValueError(f"lane-dense weight slab too large for VMEM: {w_bytes} bytes")

    # Resident bias-column mask (1.0 on the linear-term columns).
    col = jnp.arange(F_pad)
    mask = ((col % emb_dim == 0) & (col < F)).astype(jnp.float32).reshape(1, F_pad)

    # Augmented, padded input: [x | 1 | 0-pad]; cast once so the matmul is homogeneous f32.
    x2 = x.reshape(B, in_dim).astype(jnp.float32)
    x_aug = jnp.concatenate([x2, jnp.ones((B, 1), jnp.float32)], axis=-1)
    if K_pad > K:
        x_aug = jnp.pad(x_aug, ((0, 0), (0, K_pad - K)))

    out_itemsize = jnp.dtype(out_dtype).itemsize
    tb = _pick_batch_tile(B, F_pad, K_pad, out_itemsize)
    grid = (pl.cdiv(B, tb),)

    kernel = functools.partial(t2v_kernel, use_sin=(activation == "sin"))

    cost = pl.CostEstimate(                       # true (non-redundant) work; advisory
        flops=2 * B * in_dim * emb_dim + B * F,
        transcendentals=B * in_dim * (emb_dim - 1),
        bytes_accessed=(x_aug.size * 4 + w_aug.size * 4 + mask.size * 4
                        + B * F_pad * out_itemsize),
    )

    out2 = pl.pallas_call(
        kernel,
        out_shape=jax.ShapeDtypeStruct((B, F_pad), out_dtype),
        grid=grid,
        in_specs=[
            pl.BlockSpec((tb, K_pad), lambda i: (i, 0)),      # batch-tiled input
            pl.BlockSpec((K_pad, F_pad), lambda i: (0, 0)),   # resident weights + bias row
            pl.BlockSpec((1, F_pad), lambda i: (0, 0)),       # resident column mask
        ],
        out_specs=pl.BlockSpec((tb, F_pad), lambda i: (i, 0)),  # lane-dense output
        compiler_params=pltpu.CompilerParams(
            dimension_semantics=("parallel",)
        ),
        cost_estimate=cost,
    )(x_aug, w_aug, mask)

    out2 = out2[:, :F] if F_pad != F else out2
    # Free row-major reshape back to the module's [B, in_dim, emb_dim] layout.
    return out2.reshape(B, in_dim, emb_dim)


def t2v_reference(x, wb, bb, wa, ba, activation="sin"):
    bias = jnp.matmul(x, wb) + bb
    act = jnp.sin if activation == "sin" else jnp.cos
    wgts = act(jnp.matmul(x, wa) + ba)
    return jnp.concatenate([bias, wgts], axis=-1)


if __name__ == "__main__":
    key = jax.random.PRNGKey(0)
    in_dim, emb_dim = 16, 8

    k_x, k_wb, k_bb, k_wa, k_ba, k_x2 = jax.random.split(key, 6)
    wb = jax.random.normal(k_wb, (in_dim, 1), dtype=jnp.float32)
    bb = jax.random.normal(k_bb, (in_dim, 1), dtype=jnp.float32)
    wa = jax.random.normal(k_wa, (in_dim, emb_dim - 1), dtype=jnp.float32)
    ba = jax.random.normal(k_ba, (in_dim, emb_dim - 1), dtype=jnp.float32)

    # Small batch, default bf16 output (the review's top lever: halved writeback).
    B = 2
    x = jax.random.normal(k_x, (B, 1, in_dim), dtype=jnp.float32)
    ref = t2v_reference(x, wb, bb, wa, ba, "sin")
    out = jax.block_until_ready(t2v_forward(x, wb, bb, wa, ba, "sin"))
    assert out.shape == (B, in_dim, emb_dim), out.shape
    assert out.dtype == jnp.bfloat16, out.dtype
    assert jnp.allclose(out.astype(jnp.float32), ref, atol=1e-1, rtol=2e-2), "bf16 mismatch"

    # f32 output path matches the PyTorch module tightly (sin and cos branches).
    for act_name in ("sin", "cos"):
        out_f32 = jax.block_until_ready(
            t2v_forward(x, wb, bb, wa, ba, act_name, out_dtype=jnp.float32))
        ref_a = t2v_reference(x, wb, bb, wa, ba, act_name)
        assert out_f32.dtype == jnp.float32
        assert jnp.allclose(out_f32, ref_a, atol=1e-4, rtol=1e-5), f"f32 mismatch ({act_name})"

    # Larger batch exercises the multi-step "parallel" grid and a partial final
    # block (stores to padded tail rows are dropped by Pallas).
    B2 = 200
    x_big = jax.random.normal(k_x2, (B2, 1, in_dim), dtype=jnp.float32)
    out_big = jax.block_until_ready(
        t2v_forward(x_big, wb, bb, wa, ba, "sin", out_dtype=jnp.float32))
    ref_big = t2v_reference(x_big, wb, bb, wa, ba, "sin")
    assert out_big.shape == (B2, in_dim, emb_dim)
    assert jnp.allclose(out_big, ref_big, atol=1e-4, rtol=1e-5), "tiled-batch mismatch"

    print("KERNEL_OK")
</pallas_src>

<mosaic_0001>
module attributes {stable_mosaic.version = 11 : i64} {
  func.func @t2v_kernel(%arg0: i32, %arg1: memref<2x24xf32, #tpu.memory_space<vmem>>, %arg2: memref<24x128xf32, #tpu.memory_space<vmem>>, %arg3: memref<1x128xf32, #tpu.memory_space<vmem>>, %arg4: memref<2x128xbf16, #tpu.memory_space<vmem>>) attributes {dimension_semantics = [#tpu.dimension_semantics<parallel>], iteration_bounds = array<i64: 1>, scalar_prefetch = 0 : i64, scratch_operands = 0 : i64, tpu.core_type = #tpu.core_type<tc>, window_params = [{transform_indices = @transform_0, window_bounds = array<i64: 2, 24>}, {pipeline_mode = #tpu.pipeline_mode<synchronous>, transform_indices = @transform_1, window_bounds = array<i64: 24, 128>}, {pipeline_mode = #tpu.pipeline_mode<synchronous>, transform_indices = @transform_2, window_bounds = array<i64: 1, 128>}, {transform_indices = @transform_3, window_bounds = array<i64: 2, 128>}]} {
    %c0 = arith.constant 0 : index
    %c0_0 = arith.constant 0 : index
    %0 = vector.load %arg1[%c0, %c0_0] : memref<2x24xf32, #tpu.memory_space<vmem>>, vector<2x24xf32>
    %c0_1 = arith.constant 0 : index
    %c0_2 = arith.constant 0 : index
    %1 = vector.load %arg2[%c0_1, %c0_2] : memref<24x128xf32, #tpu.memory_space<vmem>>, vector<24x128xf32>
    %cst = arith.constant dense<0.000000e+00> : vector<2x128xf32>
    %2 = tpu.matmul %0, %1, %cst {dimension_numbers = #tpu.dot_dimension_numbers<[1], [0], [0], [1], [0, 0, 1, 1], [], []>} : vector<2x24xf32>, vector<24x128xf32>, vector<2x128xf32> -> vector<2x128xf32>
    %3 = math.sin %2 : vector<2x128xf32>
    %c0_3 = arith.constant 0 : index
    %c0_4 = arith.constant 0 : index
    %4 = vector.load %arg3[%c0_3, %c0_4] : memref<1x128xf32, #tpu.memory_space<vmem>>, vector<1x128xf32>
    %cst_5 = arith.constant 0.000000e+00 : f32
    %5 = vector.broadcast %cst_5 : f32 to vector<1x128xf32>
    %6 = arith.cmpf one, %4, %5 : vector<1x128xf32>
    %7 = vector.shape_cast %6 : vector<1x128xi1> to vector<1x128xi1>
    %8 = vector.broadcast %7 : vector<1x128xi1> to vector<2x128xi1>
    %9 = arith.select %8, %2, %3 : vector<2x128xi1>, vector<2x128xf32>
    %10 = arith.truncf %9 : vector<2x128xf32> to vector<2x128xbf16>
    %c0_6 = arith.constant 0 : index
    %c0_7 = arith.constant 0 : index
    %11 = vector.load %arg4[%c0_6, %c0_7] : memref<2x128xbf16, #tpu.memory_space<vmem>>, vector<2x128xbf16>
    tpu.vector_store %arg4[%c0_6, %c0_7], %10 {strides = array<i32>} : memref<2x128xbf16, #tpu.memory_space<vmem>>, vector<2x128xbf16>,
    return
  }
  func.func @transform_0(%arg0: i32) -> (i32, i32) {
    %c0_i32 = arith.constant 0 : i32
    %c0_i32_0 = arith.constant 0 : i32
    return %arg0, %c0_i32 : i32, i32
  }
  func.func @transform_1(%arg0: i32) -> (i32, i32) {
    %c0_i32 = arith.constant 0 : i32
    %c0_i32_0 = arith.constant 0 : i32
    %c0_i32_1 = arith.constant 0 : i32
    return %c0_i32, %c0_i32_0 : i32, i32
  }
  func.func @transform_2(%arg0: i32) -> (i32, i32) {
    %c0_i32 = arith.constant 0 : i32
    %c0_i32_0 = arith.constant 0 : i32
    %c0_i32_1 = arith.constant 0 : i32
    return %c0_i32, %c0_i32_0 : i32, i32
  }
  func.func @transform_3(%arg0: i32) -> (i32, i32) {
    %c0_i32 = arith.constant 0 : i32
    %c0_i32_0 = arith.constant 0 : i32
    return %arg0, %c0_i32 : i32, i32
  }
}

</mosaic_0001>

<bundles_post_ra>
// kernel: tpu_custom_call.1
= control target key start
LH: loop header
LB: loop body
LE: loop exit
PB: predicated region body
PF: predicated region fallthrough
CT: control target
= control target key end

     0   :  { %8 = vsyncpa [#allocation3], 0  ;;  %s469_s0 = inlined_call_operand.hbm [shape: f32[2,24], index: 0, kind: input, shape index: {}]   ;;  %s470_s1 = inlined_call_operand.hbm [shape: f32[24,128], index: 1, kind: input, shape index: {}]   ;;  %s471_s2 = inlined_call_operand.vmem [shape: f32[1,128], index: 2, kind: input, shape index: {}]   ;;  %s472_s3 = inlined_call_operand.hbm [shape: bf16[2,128], index: 3, kind: output, shape index: {}]  }
   0x1   :  { %9 = vsyncpa [#allocation6], 0 }
   0x2   :  { %10 = vsyncpa [#allocation4], 0  ;;  %s366_s12 = smov [#allocation2]   ;;  %s367_s14 = smov [#allocation5]  }
   0x3   :  { %s17_s13 = sshll.u32 %s366_s12, 4  ;;  %s26_s15 = sshll.u32 %s367_s14, 4  ;;  %s18_s13 = int_to_ptr.vmem [resolvable:$true] %s17_s13  ;;  %s401_s15 = int_to_ptr.vmem [resolvable:$true] %s26_s15 }
   0x4   :  { %s294_s18 = scalar_lea.hbm %s469_s0, 32 }
   0x5   :  { %p295_p0 = scmp.ne.s32.totalorder %s469_s0, %s294_s18  ;;  %p298_p1 = scmp.lt.u32.totalorder %s294_s18, %s469_s0 }
   0x7   :  { %p300_p2 = pnand %p298_p1, %p295_p0 }
   0x9   :  { %303 = shalt.err (!%p300_p2)
}
   0xa   :  { %s304_s23 = scalar_lea.vmem %s18_s13, 32  ;;  %p309_p4 = scmp.lt.s32.totalorder %s18_s13, %s18_s13 }
   0xb   :  { %p305_p3 = scmp.ne.s32.totalorder %s18_s13, %s304_s23  ;;  %p310_p5 = scmp.lt.s32.totalorder %s304_s23, %s304_s23 }
   0xd   :  { %p311_p6 = por %p310_p5, %p309_p4 }
   0xf   :  { %p312_p7 = pnand %p311_p6, %p305_p3 }
  0x11   :  { %315 = shalt.err (!%p312_p7)
}
  0x12   :  { %20 = dma.hbm_to_vmem [thread:$0]  %s469_s0, 32, %s18_s13, [#allocation3]  }
  0x13   :  { %s316_s28 = scalar_lea.hbm %s470_s1, 384 }
  0x14   :  { %p317_p8 = scmp.ne.s32.totalorder %s470_s1, %s316_s28  ;;  %p320_p9 = scmp.lt.u32.totalorder %s316_s28, %s470_s1 }
  0x16   :  { %p322_p10 = pnand %p320_p9, %p317_p8 }
  0x18   :  { %325 = shalt.err (!%p322_p10)
}
  0x19   :  { %s326_s6 = scalar_lea.vmem %s401_s15, 384  ;;  %p331_p12 = scmp.lt.s32.totalorder %s401_s15, %s401_s15 }
  0x1a   :  { %p327_p11 = scmp.ne.s32.totalorder %s401_s15, %s326_s6  ;;  %p332_p13 = scmp.lt.s32.totalorder %s326_s6, %s326_s6 }
  0x1c   :  { %p333_p0 = por %p332_p13, %p331_p12 }
  0x1e   :  { %p334_p1 = pnand %p333_p0, %p327_p11 }
  0x20   :  { %337 = shalt.err (!%p334_p1)
}
  0x21   :  { %s368_s0 = smov 128   ;;  %s369_s7 = smov 8  }
  0x22   :  { %32 = dma.hbm_to_vmem [thread:$0]  %s470_s1, 384, %s401_s15, [#allocation6], %s368_s0, %s368_s0, %s369_s7  }
  0x23   :  { %360 = dma.done.wait [#allocation3], 32  }
  0x24   :  { %361 = vsyncadd [#allocation3], 4294967264 }
  0x25   :  { %362 = dma.done.wait [#allocation6], 384  }
  0x26   :  { %363 = vsyncadd [#allocation6], 4294966912  ;;  %v370_v0 = vmov 0.0|0.0   ;;  %vm371_vm0 = vmmov 0   ;;  %v372_v1 = vmov 0.0   ;;  %v42_v2 = vld [vmem:[#allocation5] sm:$0xff] }
  0x27   :  { %268 = vmatprep.subr.bf16.mxu0 %v370_v0  ;;  %265 = vmatprep.mubr.msk.f32.mxu0 %vm371_vm0, %v372_v1  ;;  %v43_v3 = vld [vmem:[#allocation5 + $0x8] sm:$0xff]  ;;  %v44_v5 = vld [vmem:[#allocation5 + $0x10] sm:$0xff]  ;;  %v41_v6 = vld [vmem:[#allocation2] sm:$0x3]  ;;  %vm45_vm1 = vcmask 195584  }
  0x28   :  { %v269_v4 = vpack.c.bf16 %v43_v3, %v42_v2  ;;  %v373_v19 = vmov 683565275   ;;  %v374_v21 = vmov 2475754826   ;;  %v375_v24 = vmov 2131351028  }
  0x29   :  { %v376_v27 = vmov 2102212464   ;;  %v377_v30 = vmov 920167782   ;;  %v378_v33 = vmov 1326507024  }
  0x2a   :  { %270 = vmatpush3.bf16.msra.mxu0 %v269_v4 }
  0x2b   :  { %263 = vmatprep.subr.mxu0 %v372_v1 }
  0x2e   :  { %264 = vmatpush3.msra.mxu0 %v44_v5 }
  0x2f   :  { %266 = vmatmul.mubr.msk.f32.vlgmr.msra.gmra.mrb[0].mxu0 %vm45_vm1, %v41_v6 }
 0x102   :  { %v432_v7 = vpop.f32.mrb[0].mxu0 }
 0x103   :  { %v122_v8 = vand.u32 2139095040, %v432_v7  ;;  %v267_v9 = vpop.f32.mrb[1].mxu0  ;;  %v119_v13 = vand.u32 2147483647, %v432_v7  ;;  %vm121_vm9 = vcmp.lt.s32.totalorder %v432_v7, 0  ;;  %vm211_vm0 = vweird.f32 %v432_v7 }
 0x105   :  { %v123_v10 = vshrl.u32 %v122_v8, 23  ;;  %v126_v16 = vand.u32 8388607, %v119_v13  ;;  %vm120_vm10 = vcmp.le.f32.partialorder %v119_v13, 0.7853982 }
 0x107   :  { %v251_v11 = vadd.s32 4294967169, %v123_v10  ;;  %v127_v35 = vor.u32 8388608, %v126_v16 }
 0x109   :  { %v129_v12 = vadd.s32 1, %v251_v11  ;;  %v167_v49 = vshll.u32 %v127_v35, 8 }
 0x10b   :  { %vm130_vm2 = vcmp.gt.s32.totalorder %v129_v12, 0 }
 0x10c   :  { %v131_v14 = vsel %vm130_vm2, %v129_v12, 0 }
 0x10d   :  { %v133_v15 = vand.u32 31, %v131_v14  ;;  %v132_v18 = vshrl.u32 %v131_v14, 5 }
 0x10f   :  { %v134_v17 = vsub.s32 32, %v133_v15  ;;  %v136_v20 = vshll.u32 %v373_v19, %v133_v15  ;;  %v139_v22 = vshll.u32 %v374_v21, %v133_v15  ;;  %v142_v26 = vshll.u32 %v375_v24, %v133_v15 }
 0x110   :  { %v145_v29 = vshll.u32 %v376_v27, %v133_v15  ;;  %v148_v32 = vshll.u32 %v377_v30, %v133_v15  ;;  %vm151_vm3 = vcmp.lt.s32.totalorder %v132_v18, 1  ;;  %vm154_vm4 = vcmp.lt.s32.totalorder %v132_v18, 4 }
 0x111   :  { %v137_v23 = vshrl.u32 %v374_v21, %v134_v17  ;;  %v140_v25 = vshrl.u32 %v375_v24, %v134_v17  ;;  %v143_v28 = vshrl.u32 %v376_v27, %v134_v17  ;;  %v146_v31 = vshrl.u32 %v377_v30, %v134_v17 }
 0x112   :  { %v149_v34 = vshrl.u32 %v378_v33, %v134_v17  ;;  %v135_v44 = vshrl.u32 %v373_v19, %v134_v17  ;;  %vm153_vm5 = vcmp.lt.s32.totalorder %v132_v18, 3  ;;  %vm152_vm6 = vcmp.lt.s32.totalorder %v132_v18, 2 }
 0x113   :  { %v138_v36 = vor.u32 %v137_v23, %v136_v20  ;;  %v141_v37 = vor.u32 %v140_v25, %v139_v22  ;;  %v144_v38 = vor.u32 %v143_v28, %v142_v26  ;;  %v147_v39 = vor.u32 %v146_v31, %v145_v29  ;;  %v223_v29 = vld [vmem:[%s471_s2] sm:$0x1]  ;;  %s380_s2 = smov [#allocation7]  }
 0x114   :  { %v150_v40 = vor.u32 %v149_v34, %v148_v32  ;;  %v226_v26 = vlaneseq  ;;  %vm224_vm11 = vcmp.ne.f32.partialorder %v223_v29, 0.0  ;;  %v379_v33 = vmov 0   ;;  %s240_s11 = sshll.u32 %s380_s2, 4  ;;  %s241_s11 = int_to_ptr.vmem [resolvable:$true] %s240_s11 }
 0x115   :  { %v156_v41 = vsel %vm154_vm4, %v144_v38, 2102212464  ;;  %v159_v42 = vsel %vm151_vm3, %v138_v36, %v141_v37  ;;  %v163_v43 = vsel %vm151_vm3, %v141_v37, %v144_v38  ;;  %v160_v45 = vsel %vm154_vm4, %v147_v39, 920167782  ;;  %s338_s12 = scalar_lea.vmem %s241_s11, 16  ;;  %s342_s13 = scalar_lea.vmem %s241_s11, 32 }
 0x116   :  { %v164_v46 = vsel %vm154_vm4, %v150_v40, 1326507024  ;;  %v161_v47 = vsel %vm153_vm5, %v144_v38, %v160_v45  ;;  %v155_v50 = vsel %vm151_vm3, %v135_v44, %v138_v36  ;;  %v157_v51 = vsel %vm153_vm5, %v141_v37, %v156_v41  ;;  %p339_p2 = scmp.ne.s32.totalorder %s241_s11, %s338_s12  ;;  %p343_p3 = scmp.lt.s32.totalorder %s241_s11, %s241_s11 }
 0x117   :  { %v165_v48 = vsel %vm153_vm5, %v147_v39, %v164_v46  ;;  %v162_v52 = vsel %vm152_vm6, %v159_v42, %v161_v47  ;;  %v158_v58 = vsel %vm152_vm6, %v155_v50, %v157_v51  ;;  %v227_v30 = vshrl.u32 %v226_v26, 7  ;;  %p344_p4 = scmp.lt.s32.totalorder %s342_s13, %s338_s12 }
 0x118   :  { %v166_v53 = vsel %vm152_vm6, %v163_v43, %v165_v48  ;;  %v441_v56 = vmul.u32.u64.low %v167_v49, %v162_v52  ;;  %v442_v57 = vmul.u32.u64.high %v167_v49, %v162_v52, %v441_v56  ;;  %v174_v60 = vmul.u32 %v167_v49, %v158_v58 }
 0x119   :  { %v438_v54 = vmul.u32.u64.low %v167_v49, %v166_v53  ;;  %v439_v55 = vmul.u32.u64.high %v167_v49, %v166_v53, %v438_v54  ;;  %v228_v32 = vsub.s32 0, %v227_v30  ;;  %v225_v34 = vsel %vm224_vm11, 1, %v379_v33  ;;  %p345_p5 = por %p344_p4, %p343_p3 }
 0x11a   :  { %v177_v59 = vadd.s32 1, %v442_v57 }
 0x11b   :  { %vm176_vm7 = vc.u32 %v439_v55, %v441_v56  ;;  %v175_v9 = vadd.s32 %v441_v56, %v439_v55  ;;  %v229_v36 = vrot.slane %v225_v34, %v228_v32  ;;  %p346_p6 = pnand %p345_p5, %p339_p2 }
 0x11c   :  { %v178_v61 = vsel %vm176_vm7, %v177_v59, %v442_v57 }
 0x11d   :  { %v179_v62 = vadd.s32 %v178_v61, %v174_v60  ;;  %vm230_vm15 = vcmp.eq.s32.totalorder %v229_v36, 1 }
 0x11f   :  { %v180_v63 = vadd.s32 536870912, %v179_v62 }
 0x121   :  { %v181_v0 = vshrl.u32 %v180_v63, 30 }
 0x123   :  { %v182_v1 = vshll.u32 %v181_v0, 30  ;;  %v205_v22 = vsub.s32 4, %v181_v0 }
 0x125   :  { %v183_v2 = vsub.s32 %v179_v62, %v182_v1  ;;  %v206_v25 = vsel %vm121_vm9, %v205_v22, %v181_v0 }
 0x126   :  { %v208_v28 = vsel %vm120_vm10, 0, %v206_v25 }
 0x127   :  { %v185_v3 = vsub.s32 0, %v183_v2  ;;  %v212_v31 = vadd.s32 3, %v208_v28 }
 0x129   :  { %v252_v4 = vmin.u32 %v185_v3, %v183_v2  ;;  %v213_v35 = vand.u32 3, %v212_v31 }
 0x12b   :  { %v187_v5 = vclz %v252_v4  ;;  %vm218_vm12 = vcmp.eq.s32.totalorder %v213_v35, 2  ;;  %vm215_vm13 = vcmp.eq.s32.totalorder %v213_v35, 0  ;;  %vm214_vm14 = vcmp.lt.s32.totalorder %v213_v35, 2 }
 0x12d   :  { %v253_v6 = vadd.s32 4294967294, %v187_v5 }
 0x12f   :  { %vm254_vm8 = vcmp.lt.s32.totalorder %v253_v6, 0 }
 0x130   :  { %v190_v8 = vsel %vm254_vm8, 0, %v253_v6 }
 0x131   :  { %v191_v10 = vsub.s32 32, %v190_v8  ;;  %v195_v11 = vsub.s32 4294967266, %v190_v8  ;;  %v192_v12 = vshll.u32 %v183_v2, %v190_v8 }
 0x133   :  { %v193_v14 = vshrl.u32 %v175_v9, %v191_v10  ;;  %v196_v15 = vadd.s32 127, %v195_v11 }
 0x135   :  { %v194_v16 = vor.u32 %v193_v14, %v192_v12  ;;  %v197_v17 = vshll.u32 %v196_v15, 23 }
 0x137   :  { %v198_v18 = vor.u32 4788187, %v197_v17  ;;  %v201_v20 = vcvt.s32.f32 %v194_v16 }
 0x139   :  { %v199_v19 = vand.u32 2147483647, %v198_v18 }
 0x13b   :  { %v202_v21 = vmul.f32 %v201_v20, %v199_v19 }
 0x13d   :  { %v203_v23 = vxor.u32 2147483648, %v202_v21 }
 0x13f   :  { %v204_v24 = vsel %vm121_vm9, %v203_v23, %v202_v21 }
 0x140   :  { %v207_v27 = vsel %vm120_vm10, %v432_v7, %v204_v24 }
 0x141   :  { %290 = vcosq.f32 %v207_v27 }
 0x142   :  { %292 = vsinq.f32 %v207_v27 }
 0x14b   :  { %v291_v13 = vpop.eup %290 }
 0x14c   :  { %v293_v37 = vpop.eup %292  ;;  %v219_v38 = vxor.u32 2147483648, %v291_v13 }
 0x14d   :  { %v216_v39 = vxor.u32 2147483648, %v293_v37 }
 0x14e   :  { %v220_v40 = vsel %vm218_vm12, %v219_v38, %v293_v37 }
 0x14f   :  { %v217_v41 = vsel %vm215_vm13, %v291_v13, %v216_v39 }
 0x150   :  { %v221_v42 = vsel %vm214_vm14, %v217_v41, %v220_v40 }
 0x151   :  { %v222_v43 = vsel %vm211_vm0, nan, %v221_v42 }
 0x152   :  { %v231_v44 = vsel %vm230_vm15, %v432_v7, %v222_v43 }
 0x153   :  { %v232_v45 = vpack.c.bf16 %v231_v44, %v231_v44 }
 0x155   :  { %233 = vst [vmem:[#allocation7] sm:$0x1] %v232_v45 }
 0x156   :  { %349 = shalt.err (!%p346_p6)
}
 0x157   :  { %s350_s16 = scalar_lea.hbm %s472_s3, 16 }
 0x158   :  { %p351_p7 = scmp.ne.s32.totalorder %s472_s3, %s350_s16  ;;  %p354_p8 = scmp.lt.u32.totalorder %s350_s16, %s472_s3 }
 0x15a   :  { %p356_p9 = pnand %p354_p8, %p351_p7 }
 0x15c   :  { %359 = shalt.err (!%p356_p9)
}
 0x15d   :  { %243 = dma.vmem_to_hbm [thread:$0]  %s241_s11, 16, %s472_s3, [#allocation4]  }
 0x15e   :  { %364 = dma.done.wait [#allocation4], 16  }
 0x15f   :  { %365 = vsyncadd [#allocation4], 4294967280 }
 0x160   :  { %247 = vsyncpa [#allocation3], 1 }
 0x161   :  { %248 = vsyncpa [#allocation6], 1 }
 0x162   :  { %249 = vsyncpa [#allocation4], 1 }

</bundles_post_ra>
